<compile_context>
chip_gen: v7x
topology: tpu7x:2x2x1
jax: 0.10.0
libtpu: 0.0.40
codegen_flags: <defaults>
</compile_context>

<pallas_src>
import jax
import jax.numpy as jnp
from jax.experimental import pallas as pl
from jax.experimental.pallas import tpu as pltpu

BETA = 0.95            # unused in a single zero-state step (mem_prev = 0)
THRESHOLD = 1.0
NUM_INPUTS = 28 * 28   # 784
NUM_HIDDEN = 256
NUM_OUTPUTS = 10
OUT_PAD = 128          # lane-dense fc2 output width (>= NUM_OUTPUTS)


def _cdiv(a, b):
    return (a + b - 1) // b


def _round_up(x, m):
    return _cdiv(x, m) * m


def _choose_tiling(B, block_b):
    """Pick (tile, padded_batch, n_tiles): sublane-aligned, >=2 grid steps when
    there is enough work (v7x dual-TC), and minimal padded rows."""
    Bp8 = _round_up(max(B, 8), 8)
    n = _cdiv(Bp8, block_b)
    if Bp8 >= 16:
        n = max(n, 2)          # let both v7x TensorCores get a tile
    TB = _round_up(_cdiv(Bp8, n), 8)
    Bp = n * TB
    return TB, Bp, n


def snn_net_kernel(x_ref, w1_ref, b1_ref, w2_ref, b2_ref, spk1_ref, spk2_ref):
    # ---- fc1: x cast to bf16 in-kernel, MXU matmul, f32 accumulate + bias ----
    x_bf = x_ref[...].astype(jnp.bfloat16)
    cur1 = jnp.dot(x_bf, w1_ref[...],
                   preferred_element_type=jnp.float32) + b1_ref[...]
    # ---- lif1: mem1 = cur1 (zero initial membrane), spk1 = H(cur1 - thr) ----
    spk1 = (cur1 > THRESHOLD).astype(jnp.bfloat16)   # exactly 0/1 in bf16
    spk1_ref[...] = spk1

    # ---- fc2 on lane-padded (256 x 128) bf16 weights ----
    cur2 = jnp.dot(spk1, w2_ref[...],
                   preferred_element_type=jnp.float32) + b2_ref[...]
    # ---- lif2 ----
    spk2_ref[...] = (cur2 > THRESHOLD).astype(spk2_ref.dtype)


def prepare_params(w1, b1, w2, b2):
    """One-time, cacheable conversion of PyTorch-layout params to kernel layout.

    w1: (256, 784), b1: (256,), w2: (10, 256), b2: (10,).
    """
    w1t_bf = jnp.asarray(w1).T.astype(jnp.bfloat16)                 # (784, 256)
    b1_row = jnp.asarray(b1, jnp.float32).reshape(1, NUM_HIDDEN)    # (1, 256)
    w2_pad = jnp.zeros((NUM_HIDDEN, OUT_PAD), jnp.bfloat16)
    w2_pad = w2_pad.at[:, :NUM_OUTPUTS].set(jnp.asarray(w2).T.astype(jnp.bfloat16))
    b2_pad = jnp.zeros((1, OUT_PAD), jnp.float32)
    b2_pad = b2_pad.at[0, :NUM_OUTPUTS].set(jnp.asarray(b2, jnp.float32))
    return w1t_bf, b1_row, w2_pad, b2_pad


def snn_net_forward(x, params, *, block_b=1024, out_dtype=jnp.bfloat16):
    """x: (B, 784) float; params from prepare_params(). Returns (spk1, spk2)."""
    w1t_bf, b1_row, w2_pad, b2_pad = params
    B = x.shape[0]
    TB, Bp, n_tiles = _choose_tiling(B, block_b)

    x = x.astype(jnp.float32)
    if Bp != B:
        x = jnp.pad(x, ((0, Bp - B), (0, 0)))

    grid = (n_tiles,)
    flops = 2 * Bp * NUM_INPUTS * NUM_HIDDEN + 2 * Bp * NUM_HIDDEN * OUT_PAD
    bytes_accessed = (Bp * NUM_INPUTS * 4                       # x (f32, single read)
                      + NUM_INPUTS * NUM_HIDDEN * 2             # w1 (bf16)
                      + NUM_HIDDEN * OUT_PAD * 2                # w2 (bf16, padded)
                      + (NUM_HIDDEN + OUT_PAD) * 4              # biases (f32)
                      + Bp * NUM_HIDDEN * 2                     # spk1 out (bf16)
                      + Bp * OUT_PAD * 2)                       # spk2 out (bf16)

    spk1, spk2_pad = pl.pallas_call(
        snn_net_kernel,
        out_shape=(
            jax.ShapeDtypeStruct((Bp, NUM_HIDDEN), jnp.bfloat16),   # spk1
            jax.ShapeDtypeStruct((Bp, OUT_PAD), jnp.bfloat16),      # spk2 (padded)
        ),
        grid=grid,
        in_specs=[
            pl.BlockSpec((TB, NUM_INPUTS), lambda i: (i, 0)),          # x tile (f32)
            pl.BlockSpec((NUM_INPUTS, NUM_HIDDEN), lambda i: (0, 0)),  # w1 resident
            pl.BlockSpec((1, NUM_HIDDEN), lambda i: (0, 0)),           # b1 resident
            pl.BlockSpec((NUM_HIDDEN, OUT_PAD), lambda i: (0, 0)),     # w2 resident
            pl.BlockSpec((1, OUT_PAD), lambda i: (0, 0)),              # b2 resident
        ],
        out_specs=(
            pl.BlockSpec((TB, NUM_HIDDEN), lambda i: (i, 0)),
            pl.BlockSpec((TB, OUT_PAD), lambda i: (i, 0)),
        ),
        compiler_params=pltpu.CompilerParams(
            dimension_semantics=("parallel",),
            # ~<10 MiB/step with default block_b; stays v7x-safe (64 MiB VMEM/TC).
            vmem_limit_bytes=48 * 1024 * 1024,
        ),
        cost_estimate=pl.CostEstimate(
            flops=flops, transcendentals=0, bytes_accessed=bytes_accessed),
    )(x, w1t_bf, b1_row, w2_pad, b2_pad)

    spk1 = spk1[:B]
    spk2 = spk2_pad[:B, :NUM_OUTPUTS]
    if out_dtype != jnp.bfloat16:
        # Spikes are exactly 0/1 so this cast is exact.
        spk1 = spk1.astype(out_dtype)
        spk2 = spk2.astype(out_dtype)
    return spk1, spk2


def init_params(key):
    """Deterministic init matching nn.Linear's U(-1/sqrt(fan_in), 1/sqrt(fan_in))."""
    k1, k2, k3, k4 = jax.random.split(key, 4)
    bound1 = 1.0 / float(NUM_INPUTS) ** 0.5
    w1 = jax.random.uniform(k1, (NUM_HIDDEN, NUM_INPUTS), jnp.float32, -bound1, bound1)
    b1 = jax.random.uniform(k2, (NUM_HIDDEN,), jnp.float32, -bound1, bound1)
    bound2 = 1.0 / float(NUM_HIDDEN) ** 0.5
    w2 = jax.random.uniform(k3, (NUM_OUTPUTS, NUM_HIDDEN), jnp.float32, -bound2, bound2)
    b2 = jax.random.uniform(k4, (NUM_OUTPUTS,), jnp.float32, -bound2, bound2)
    return w1, b1, w2, b2


def reference_forward_bf16(x, w1, b1, w2, b2):
    """Reference with the same bf16-operand / f32-accumulate matmul convention."""
    cur1 = jnp.dot(x.astype(jnp.bfloat16), w1.T.astype(jnp.bfloat16),
                   preferred_element_type=jnp.float32) + b1
    spk1 = (cur1 > THRESHOLD).astype(jnp.float32)
    cur2 = jnp.dot(spk1.astype(jnp.bfloat16), w2.T.astype(jnp.bfloat16),
                   preferred_element_type=jnp.float32) + b2
    spk2 = (cur2 > THRESHOLD).astype(jnp.float32)
    return spk1, spk2, cur1, cur2


if __name__ == "__main__":
    key = jax.random.PRNGKey(0)
    kp, kx = jax.random.split(key)
    w1, b1, w2, b2 = init_params(kp)
    params = prepare_params(w1, b1, w2, b2)   # hoisted / cacheable weight prep

    batch = 2
    x = jax.random.normal(kx, (batch, NUM_INPUTS), jnp.float32)

    spk1, spk2 = snn_net_forward(x, params)
    jax.block_until_ready((spk1, spk2))

    ref1, ref2, cur1, cur2 = reference_forward_bf16(x, w1, b1, w2, b2)
    assert spk1.shape == (batch, NUM_HIDDEN) and spk2.shape == (batch, NUM_OUTPUTS)
    spk1_f = spk1.astype(jnp.float32)
    spk2_f = spk2.astype(jnp.float32)
    # Exact match expected; mismatches are only tolerated for currents sitting
    # essentially on the threshold (bf16 rounding boundary cases).
    eps = 1e-2
    ok1 = bool(jnp.all((spk1_f == ref1) | (jnp.abs(cur1 - THRESHOLD) < eps)))
    ok2 = bool(jnp.all((spk2_f == ref2) | (jnp.abs(cur2 - THRESHOLD) < eps)))
    assert ok1, "spk1 mismatch vs reference"
    assert ok2, "spk2 mismatch vs reference"

    print("KERNEL_OK")
</pallas_src>

<mosaic_0001>
module attributes {stable_mosaic.version = 11 : i64} {
  func.func @snn_net_kernel(%arg0: i32, %arg1: memref<8x784xf32, #tpu.memory_space<vmem>>, %arg2: memref<784x256xbf16, #tpu.memory_space<vmem>>, %arg3: memref<1x256xf32, #tpu.memory_space<vmem>>, %arg4: memref<256x128xbf16, #tpu.memory_space<vmem>>, %arg5: memref<1x128xf32, #tpu.memory_space<vmem>>, %arg6: memref<8x256xbf16, #tpu.memory_space<vmem>>, %arg7: memref<8x128xbf16, #tpu.memory_space<vmem>>) attributes {dimension_semantics = [#tpu.dimension_semantics<parallel>], iteration_bounds = array<i64: 1>, scalar_prefetch = 0 : i64, scratch_operands = 0 : i64, tpu.core_type = #tpu.core_type<tc>, window_params = [{transform_indices = @transform_0, window_bounds = array<i64: 8, 784>}, {pipeline_mode = #tpu.pipeline_mode<synchronous>, transform_indices = @transform_1, window_bounds = array<i64: 784, 256>}, {pipeline_mode = #tpu.pipeline_mode<synchronous>, transform_indices = @transform_2, window_bounds = array<i64: 1, 256>}, {pipeline_mode = #tpu.pipeline_mode<synchronous>, transform_indices = @transform_3, window_bounds = array<i64: 256, 128>}, {pipeline_mode = #tpu.pipeline_mode<synchronous>, transform_indices = @transform_4, window_bounds = array<i64: 1, 128>}, {transform_indices = @transform_5, window_bounds = array<i64: 8, 256>}, {transform_indices = @transform_6, window_bounds = array<i64: 8, 128>}]} {
    %c0 = arith.constant 0 : index
    %c0_0 = arith.constant 0 : index
    %0 = vector.load %arg1[%c0, %c0_0] : memref<8x784xf32, #tpu.memory_space<vmem>>, vector<8x784xf32>
    %1 = arith.truncf %0 : vector<8x784xf32> to vector<8x784xbf16>
    %c0_1 = arith.constant 0 : index
    %c0_2 = arith.constant 0 : index
    %2 = vector.load %arg2[%c0_1, %c0_2] : memref<784x256xbf16, #tpu.memory_space<vmem>>, vector<784x256xbf16>
    %cst = arith.constant dense<0.000000e+00> : vector<8x256xf32>
    %3 = tpu.matmul %1, %2, %cst {dimension_numbers = #tpu.dot_dimension_numbers<[1], [0], [0], [1], [0, 0, 1, 1], [], []>} : vector<8x784xbf16>, vector<784x256xbf16>, vector<8x256xf32> -> vector<8x256xf32>
    %c0_3 = arith.constant 0 : index
    %c0_4 = arith.constant 0 : index
    %4 = vector.load %arg3[%c0_3, %c0_4] : memref<1x256xf32, #tpu.memory_space<vmem>>, vector<1x256xf32>
    %5 = vector.broadcast %4 : vector<1x256xf32> to vector<8x256xf32>
    %6 = arith.addf %3, %5 : vector<8x256xf32>
    %cst_5 = arith.constant 1.000000e+00 : f32
    %7 = vector.broadcast %cst_5 : f32 to vector<8x256xf32>
    %8 = arith.cmpf ogt, %6, %7 : vector<8x256xf32>
    %9 = arith.extui %8 : vector<8x256xi1> to vector<8x256xi32>
    %10 = arith.sitofp %9 : vector<8x256xi32> to vector<8x256xf32>
    %11 = arith.truncf %10 : vector<8x256xf32> to vector<8x256xbf16>
    %c0_6 = arith.constant 0 : index
    %c0_7 = arith.constant 0 : index
    %12 = vector.load %arg6[%c0_6, %c0_7] : memref<8x256xbf16, #tpu.memory_space<vmem>>, vector<8x256xbf16>
    tpu.vector_store %arg6[%c0_6, %c0_7], %11 {strides = array<i32>} : memref<8x256xbf16, #tpu.memory_space<vmem>>, vector<8x256xbf16>,
    %c0_8 = arith.constant 0 : index
    %c0_9 = arith.constant 0 : index
    %13 = vector.load %arg4[%c0_8, %c0_9] : memref<256x128xbf16, #tpu.memory_space<vmem>>, vector<256x128xbf16>
    %cst_10 = arith.constant dense<0.000000e+00> : vector<8x128xf32>
    %14 = tpu.matmul %11, %13, %cst_10 {dimension_numbers = #tpu.dot_dimension_numbers<[1], [0], [0], [1], [0, 0, 1, 1], [], []>} : vector<8x256xbf16>, vector<256x128xbf16>, vector<8x128xf32> -> vector<8x128xf32>
    %c0_11 = arith.constant 0 : index
    %c0_12 = arith.constant 0 : index
    %15 = vector.load %arg5[%c0_11, %c0_12] : memref<1x128xf32, #tpu.memory_space<vmem>>, vector<1x128xf32>
    %16 = vector.broadcast %15 : vector<1x128xf32> to vector<8x128xf32>
    %17 = arith.addf %14, %16 : vector<8x128xf32>
    %cst_13 = arith.constant 1.000000e+00 : f32
    %18 = vector.broadcast %cst_13 : f32 to vector<8x128xf32>
    %19 = arith.cmpf ogt, %17, %18 : vector<8x128xf32>
    %20 = arith.extui %19 : vector<8x128xi1> to vector<8x128xi32>
    %21 = arith.sitofp %20 : vector<8x128xi32> to vector<8x128xf32>
    %22 = arith.truncf %21 : vector<8x128xf32> to vector<8x128xbf16>
    %c0_14 = arith.constant 0 : index
    %c0_15 = arith.constant 0 : index
    %23 = vector.load %arg7[%c0_14, %c0_15] : memref<8x128xbf16, #tpu.memory_space<vmem>>, vector<8x128xbf16>
    tpu.vector_store %arg7[%c0_14, %c0_15], %22 {strides = array<i32>} : memref<8x128xbf16, #tpu.memory_space<vmem>>, vector<8x128xbf16>,
    return
  }
  func.func @transform_0(%arg0: i32) -> (i32, i32) {
    %c0_i32 = arith.constant 0 : i32
    %c0_i32_0 = arith.constant 0 : i32
    return %arg0, %c0_i32 : i32, i32
  }
  func.func @transform_1(%arg0: i32) -> (i32, i32) {
    %c0_i32 = arith.constant 0 : i32
    %c0_i32_0 = arith.constant 0 : i32
    %c0_i32_1 = arith.constant 0 : i32
    return %c0_i32, %c0_i32_0 : i32, i32
  }
  func.func @transform_2(%arg0: i32) -> (i32, i32) {
    %c0_i32 = arith.constant 0 : i32
    %c0_i32_0 = arith.constant 0 : i32
    %c0_i32_1 = arith.constant 0 : i32
    return %c0_i32, %c0_i32_0 : i32, i32
  }
  func.func @transform_3(%arg0: i32) -> (i32, i32) {
    %c0_i32 = arith.constant 0 : i32
    %c0_i32_0 = arith.constant 0 : i32
    %c0_i32_1 = arith.constant 0 : i32
    return %c0_i32, %c0_i32_0 : i32, i32
  }
  func.func @transform_4(%arg0: i32) -> (i32, i32) {
    %c0_i32 = arith.constant 0 : i32
    %c0_i32_0 = arith.constant 0 : i32
    %c0_i32_1 = arith.constant 0 : i32
    return %c0_i32, %c0_i32_0 : i32, i32
  }
  func.func @transform_5(%arg0: i32) -> (i32, i32) {
    %c0_i32 = arith.constant 0 : i32
    %c0_i32_0 = arith.constant 0 : i32
    return %arg0, %c0_i32 : i32, i32
  }
  func.func @transform_6(%arg0: i32) -> (i32, i32) {
    %c0_i32 = arith.constant 0 : i32
    %c0_i32_0 = arith.constant 0 : i32
    return %arg0, %c0_i32 : i32, i32
  }
}

</mosaic_0001>

<bundles_post_ra>
// kernel: tpu_custom_call.1
= control target key start
LH: loop header
LB: loop body
LE: loop exit
PB: predicated region body
PF: predicated region fallthrough
CT: control target
= control target key end

     0   :  { %12 = vsyncpa [#allocation3], 0  ;;  %s1634_s0 = inlined_call_operand.hbm [shape: f32[8,784], index: 0, kind: input, shape index: {}]   ;;  %s1635_s1 = inlined_call_operand.hbm [shape: bf16[784,256], index: 1, kind: input, shape index: {}]   ;;  %s1636_s2 = inlined_call_operand.vmem [shape: f32[1,256], index: 2, kind: input, shape index: {}]   ;;  %s1637_s3 = inlined_call_operand.hbm [shape: bf16[256,128], index: 3, kind: input, shape index: {}]   ;;  %s1638_s4 = inlined_call_operand.vmem [shape: f32[1,128], index: 4, kind: input, shape index: {}]   ;;  %s1639_s5 = inlined_call_operand.hbm [shape: bf16[8,256], index: 5, kind: output, shape index: {0}]   ;;  %s1640_s6 = inlined_call_operand.hbm [shape: bf16[8,128], index: 6, kind: output, shape index: {1}]  }
   0x1   :  { %13 = vsyncpa [#allocation6], 0 }
   0x2   :  { %14 = vsyncpa [#allocation4], 0 }
   0x3   :  { %15 = vsyncpa [#allocation10], 0  ;;  %s1521_s21 = smov [#allocation5]   ;;  %s1403_s25 = scalar_lea.hbm %s1635_s1, 12544 }
   0x4   :  { %s31_s22 = sshll.u32 %s1521_s21, 4  ;;  %p1404_p0 = scmp.ne.s32.totalorder %s1635_s1, %s1403_s25  ;;  %s32_s22 = int_to_ptr.vmem [resolvable:$true] %s31_s22 }
   0x5   :  { %p1407_p1 = scmp.lt.u32.totalorder %s1403_s25, %s1635_s1 }
   0x7   :  { %p1409_p2 = pnand %p1407_p1, %p1404_p0 }
   0x9   :  { %1412 = shalt.err (!%p1409_p2)
}
   0xa   :  { %s1413_s30 = scalar_lea.vmem %s32_s22, 12544  ;;  %p1418_p4 = scmp.lt.s32.totalorder %s32_s22, %s32_s22 }
   0xb   :  { %p1414_p3 = scmp.ne.s32.totalorder %s32_s22, %s1413_s30  ;;  %p1419_p5 = scmp.lt.s32.totalorder %s1413_s30, %s1413_s30 }
   0xd   :  { %p1420_p6 = por %p1419_p5, %p1418_p4 }
   0xf   :  { %p1421_p7 = pnand %p1420_p6, %p1414_p3 }
  0x11   :  { %1424 = shalt.err (!%p1421_p7)
}
  0x12   :  { %s1522_s7 = smov 128   ;;  %s1523_s8 = smov 8  }
  0x13   :  { %37 = dma.hbm_to_vmem [thread:$0]  %s1635_s1, 12544, %s32_s22, [#allocation6], %s1522_s7, %s1522_s7, %s1523_s8  }
  0x14   :  { %s1524_s11 = smov [#allocation2]   ;;  %s1525_s13 = smov [#allocation7]  }
  0x15   :  { %s22_s12 = sshll.u32 %s1524_s11, 4  ;;  %s45_s14 = sshll.u32 %s1525_s13, 4  ;;  %s23_s12 = int_to_ptr.vmem [resolvable:$true] %s22_s12  ;;  %s46_s14 = int_to_ptr.vmem [resolvable:$true] %s45_s14 }
  0x16   :  { %s1425_s17 = scalar_lea.hbm %s1634_s0, 896 }
  0x17   :  { %p1426_p8 = scmp.ne.s32.totalorder %s1634_s0, %s1425_s17  ;;  %p1429_p9 = scmp.lt.u32.totalorder %s1425_s17, %s1634_s0 }
  0x19   :  { %p1431_p10 = pnand %p1429_p9, %p1426_p8 }
  0x1b   :  { %1434 = shalt.err (!%p1431_p10)
}
  0x1c   :  { %s1435_s1 = scalar_lea.vmem %s23_s12, 896  ;;  %p1440_p12 = scmp.lt.s32.totalorder %s23_s12, %s23_s12 }
  0x1d   :  { %p1436_p11 = scmp.ne.s32.totalorder %s23_s12, %s1435_s1  ;;  %p1441_p13 = scmp.lt.s32.totalorder %s1435_s1, %s1435_s1 }
  0x1f   :  { %p1442_p0 = por %p1441_p13, %p1440_p12 }
  0x21   :  { %p1443_p1 = pnand %p1442_p0, %p1436_p11 }
  0x23   :  { %1446 = shalt.err (!%p1443_p1)
}
  0x24   :  { %25 = dma.hbm_to_vmem [thread:$0]  %s1634_s0, 896, %s23_s12, [#allocation3]  }
  0x25   :  { %s1447_s26 = scalar_lea.hbm %s1637_s3, 2048 }
  0x26   :  { %p1448_p2 = scmp.ne.s32.totalorder %s1637_s3, %s1447_s26  ;;  %p1451_p3 = scmp.lt.u32.totalorder %s1447_s26, %s1637_s3 }
  0x28   :  { %p1453_p4 = pnand %p1451_p3, %p1448_p2 }
  0x2a   :  { %1456 = shalt.err (!%p1453_p4)
}
  0x2b   :  { %s1457_s7 = scalar_lea.vmem %s46_s14, 2048  ;;  %p1462_p6 = scmp.lt.s32.totalorder %s46_s14, %s46_s14 }
  0x2c   :  { %p1458_p5 = scmp.ne.s32.totalorder %s46_s14, %s1457_s7  ;;  %p1463_p7 = scmp.lt.s32.totalorder %s1457_s7, %s1457_s7 }
  0x2e   :  { %p1464_p8 = por %p1463_p7, %p1462_p6 }
  0x30   :  { %p1465_p9 = pnand %p1464_p8, %p1458_p5 }
  0x32   :  { %1468 = shalt.err (!%p1465_p9)
}
  0x33   :  { %s1526_s0 = smov 64   ;;  %s1527_s8 = smov 4  }
  0x34   :  { %51 = dma.hbm_to_vmem [thread:$0]  %s1637_s3, 2048, %s46_s14, [#allocation6], %s1526_s0, %s1526_s0, %s1527_s8  }
  0x35   :  { %1513 = dma.done.wait [#allocation3], 896  }
  0x36   :  { %1514 = vsyncadd [#allocation3], 4294966400 }
  0x37   :  { %1515 = dma.done.wait [#allocation6], 14592  }
  0x38   :  { %1516 = vsyncadd [#allocation6], 4294952704  ;;  %v1240_v0 = vld [vmem:[#allocation5 + $0x104] ss:$8 sps:$4 sm:$0xff]   ;;  %v1242_v1 = vld [vmem:[#allocation5 + $0x100] ss:$8 sps:$4 sm:$0xff]  }
  0x39   :  { %723 = vmatprep.subr.bf16.mxu0 %v1240_v0  ;;  %v1243_v2 = vld [vmem:[#allocation5 + $0x114] ss:$8 sps:$4 sm:$0xff]   ;;  %v1245_v3 = vld [vmem:[#allocation5 + $0x110] ss:$8 sps:$4 sm:$0xff]   ;;  %v1246_v4 = vld [vmem:[#allocation5 + $0x124] ss:$8 sps:$4 sm:$0xff]  }
  0x3a   :  { %724 = vmatpush1.bf16.msra.mxu0 %v1242_v1  ;;  %v1248_v5 = vld [vmem:[#allocation5 + $0x120] ss:$8 sps:$4 sm:$0xff]   ;;  %v1249_v6 = vld [vmem:[#allocation5 + $0x134] ss:$8 sps:$4 sm:$0xff]   ;;  %v1251_v7 = vld [vmem:[#allocation5 + $0x130] ss:$8 sps:$4 sm:$0xff]  }
  0x3b   :  { %725 = vmatprep.subr.bf16.mxu0 %v1243_v2  ;;  %v1252_v8 = vld [vmem:[#allocation5 + $0x144] ss:$8 sps:$4 sm:$0xff]   ;;  %v1254_v9 = vld [vmem:[#allocation5 + $0x140] ss:$8 sps:$4 sm:$0xff]   ;;  %v1255_v10 = vld [vmem:[#allocation5 + $0x154] ss:$8 sps:$4 sm:$0xff]  }
  0x3c   :  { %v1257_v11 = vld [vmem:[#allocation5 + $0x150] ss:$8 sps:$4 sm:$0xff]   ;;  %v1282_v12 = vld [vmem:[#allocation5 + $0x4] ss:$8 sps:$4 sm:$0xff]   ;;  %v1284_v13 = vld [vmem:[#allocation5] ss:$8 sps:$4 sm:$0xff]  }
  0x3d   :  { %v1258_v14 = vld [vmem:[#allocation5 + $0x164] ss:$8 sps:$4 sm:$0xff]   ;;  %682 = vmatprep.subr.bf16.mxu1 %v1282_v12  ;;  %v1288_v15 = vld [vmem:[#allocation5 + $0x14] ss:$8 sps:$4 sm:$0xff]   ;;  %v1290_v16 = vld [vmem:[#allocation5 + $0x10] ss:$8 sps:$4 sm:$0xff]  }
  0x3e   :  { %726 = vmatpush1.bf16.msra.mxu0 %v1245_v3  ;;  %683 = vmatpush1.bf16.msra.mxu1 %v1284_v13  ;;  %v1260_v17 = vld [vmem:[#allocation5 + $0x160] ss:$8 sps:$4 sm:$0xff]   ;;  %v1261_v18 = vld [vmem:[#allocation5 + $0x174] ss:$8 sps:$4 sm:$0xff]   ;;  %v1294_v19 = vld [vmem:[#allocation5 + $0x24] ss:$8 sps:$4 sm:$0xff]  }
  0x3f   :  { %727 = vmatprep.subr.bf16.mxu0 %v1246_v4  ;;  %684 = vmatprep.subr.bf16.mxu1 %v1288_v15  ;;  %v67_v20 = vld [vmem:[#allocation2 + $0x18] sm:$0xff]  ;;  %v1263_v23 = vld [vmem:[#allocation5 + $0x170] ss:$8 sps:$4 sm:$0xff]   ;;  %v1300_v25 = vld [vmem:[#allocation5 + $0x34] ss:$8 sps:$4 sm:$0xff]   ;;  %vm678_vm0 = vcmask 130048  }
  0x40   :  { %v1296_v21 = vld [vmem:[#allocation5 + $0x20] ss:$8 sps:$4 sm:$0xff]   ;;  %v74_v22 = vpack.c.bf16 %v67_v20, %v67_v20  ;;  %v1264_v24 = vld [vmem:[#allocation5 + $0x184] ss:$8 sps:$4 sm:$0xff]   ;;  %v1302_v27 = vld [vmem:[#allocation5 + $0x30] ss:$8 sps:$4 sm:$0xff]  }
  0x41   :  { %v1266_v26 = vld [vmem:[#allocation5 + $0x180] ss:$8 sps:$4 sm:$0xff]   ;;  %v1306_v28 = vld [vmem:[#allocation5 + $0x44] ss:$8 sps:$4 sm:$0xff]   ;;  %v1267_v29 = vld [vmem:[#allocation5 + $0x194] ss:$8 sps:$4 sm:$0xff]  }
  0x42   :  { %728 = vmatpush1.bf16.msra.mxu0 %v1248_v5  ;;  %685 = vmatpush1.bf16.msra.mxu1 %v1290_v16  ;;  %v1269_v30 = vld [vmem:[#allocation5 + $0x190] ss:$8 sps:$4 sm:$0xff]   ;;  %v1308_v31 = vld [vmem:[#allocation5 + $0x40] ss:$8 sps:$4 sm:$0xff]   ;;  %v1312_v32 = vld [vmem:[#allocation5 + $0x54] ss:$8 sps:$4 sm:$0xff]  }
  0x43   :  { %729 = vmatprep.subr.bf16.mxu0 %v1249_v6  ;;  %686 = vmatprep.subr.bf16.mxu1 %v1294_v19  ;;  %v1270_v33 = vld [vmem:[#allocation5 + $0x1a4] ss:$8 sps:$4 sm:$0xff]   ;;  %v1272_v34 = vld [vmem:[#allocation5 + $0x1a0] ss:$8 sps:$4 sm:$0xff]   ;;  %v1314_v35 = vld [vmem:[#allocation5 + $0x50] ss:$8 sps:$4 sm:$0xff]  }
  0x44   :  { %755 = vmatprep.mubr.bf16.mxu0 %v74_v22  ;;  %v1318_v36 = vld [vmem:[#allocation5 + $0x64] ss:$8 sps:$4 sm:$0xff]   ;;  %v1273_v37 = vld [vmem:[#allocation5 + $0x1b4] ss:$8 sps:$4 sm:$0xff]   ;;  %v1275_v38 = vld [vmem:[#allocation5 + $0x1b0] ss:$8 sps:$4 sm:$0xff]  }
  0x45   :  { %v1320_v39 = vld [vmem:[#allocation5 + $0x60] ss:$8 sps:$4 sm:$0xff]   ;;  %v1324_v40 = vld [vmem:[#allocation5 + $0x74] ss:$8 sps:$4 sm:$0xff]   ;;  %v1276_v41 = vld [vmem:[#allocation5 + $0x1c4] ss:$8 sps:$4 sm:$0xff]  }
  0x46   :  { %730 = vmatpush1.bf16.msra.mxu0 %v1251_v7  ;;  %687 = vmatpush1.bf16.msra.mxu1 %v1296_v21  ;;  %v1278_v42 = vld [vmem:[#allocation5 + $0x1c0] ss:$8 sps:$4 sm:$0xff]   ;;  %v1326_v43 = vld [vmem:[#allocation5 + $0x70] ss:$8 sps:$4 sm:$0xff]   ;;  %v1330_v44 = vld [vmem:[#allocation5 + $0x84] ss:$8 sps:$4 sm:$0xff]  }
  0x47   :  { %731 = vmatprep.subr.bf16.mxu0 %v1252_v8  ;;  %688 = vmatprep.subr.bf16.mxu1 %v1300_v25  ;;  %v1279_v45 = vld [vmem:[#allocation5 + $0x1d4] ss:$8 sps:$4 sm:$0xff]   ;;  %v1281_v46 = vld [vmem:[#allocation5 + $0x1d0] ss:$8 sps:$4 sm:$0xff]   ;;  %v1332_v47 = vld [vmem:[#allocation5 + $0x80] ss:$8 sps:$4 sm:$0xff]  }
  0x48   :  { %v1336_v48 = vld [vmem:[#allocation5 + $0x94] ss:$8 sps:$4 sm:$0xff]   ;;  %v1285_v49 = vld [vmem:[#allocation5 + $0x1e4] ss:$8 sps:$4 sm:$0xff]   ;;  %v1287_v50 = vld [vmem:[#allocation5 + $0x1e0] ss:$8 sps:$4 sm:$0xff]  }
  0x49   :  { %v1338_v51 = vld [vmem:[#allocation5 + $0x90] ss:$8 sps:$4 sm:$0xff]   ;;  %v1342_v52 = vld [vmem:[#allocation5 + $0xa4] ss:$8 sps:$4 sm:$0xff]   ;;  %v1291_v53 = vld [vmem:[#allocation5 + $0x1f4] ss:$8 sps:$4 sm:$0xff]  }
  0x4a   :  { %732 = vmatpush1.bf16.msra.mxu0 %v1254_v9  ;;  %689 = vmatpush1.bf16.msra.mxu1 %v1302_v27  ;;  %v1293_v54 = vld [vmem:[#allocation5 + $0x1f0] ss:$8 sps:$4 sm:$0xff]   ;;  %v1344_v56 = vld [vmem:[#allocation5 + $0xa0] ss:$8 sps:$4 sm:$0xff]   ;;  %v1348_v57 = vld [vmem:[#allocation5 + $0xb4] ss:$8 sps:$4 sm:$0xff]  }
  0x4b   :  { %733 = vmatprep.subr.bf16.mxu0 %v1255_v10  ;;  %690 = vmatprep.subr.bf16.mxu1 %v1306_v28  ;;  %v66_v55 = vld [vmem:[#allocation2 + $0x10] sm:$0xff]  ;;  %v1299_v58 = vld [vmem:[#allocation5 + $0x204] ss:$8 sps:$4 sm:$0xff]   ;;  %v65_v61 = vld [vmem:[#allocation2 + $0x8] sm:$0xff] }
  0x4c   :  { %v73_v59 = vpack.c.bf16 %v66_v55, %v66_v55  ;;  %v1350_v60 = vld [vmem:[#allocation5 + $0xb0] ss:$8 sps:$4 sm:$0xff]   ;;  %v1297_v62 = vld [vmem:[#allocation5 + $0x200] ss:$8 sps:$4 sm:$0xff]   ;;  %v1354_v63 = vld [vmem:[#allocation5 + $0xc4] ss:$8 sps:$4 sm:$0xff]   ;;  %v72_v0 = vpack.c.bf16 %v65_v61, %v65_v61 }
  0x4d   :  { %v1305_v1 = vld [vmem:[#allocation5 + $0x214] ss:$8 sps:$4 sm:$0xff]   ;;  %v1356_v2 = vld [vmem:[#allocation5 + $0xc0] ss:$8 sps:$4 sm:$0xff]   ;;  %v1303_v4 = vld [vmem:[#allocation5 + $0x210] ss:$8 sps:$4 sm:$0xff]  }
  0x4e   :  { %734 = vmatpush1.bf16.msra.mxu0 %v1257_v11  ;;  %691 = vmatpush1.bf16.msra.mxu1 %v1308_v31  ;;  %v69_v3 = vld [vmem:[#allocation2 + $0x28] sm:$0xff]  ;;  %v1311_v7 = vld [vmem:[#allocation5 + $0x224] ss:$8 sps:$4 sm:$0xff]   ;;  %v1309_v8 = vld [vmem:[#allocation5 + $0x220] ss:$8 sps:$4 sm:$0xff]  }
  0x4f   :  { %735 = vmatprep.subr.bf16.mxu0 %v1258_v14  ;;  %692 = vmatprep.subr.bf16.mxu1 %v1312_v32  ;;  %v1360_v5 = vld [vmem:[#allocation5 + $0xd4] ss:$8 sps:$4 sm:$0xff]   ;;  %v76_v6 = vpack.c.bf16 %v69_v3, %v69_v3  ;;  %v1362_v9 = vld [vmem:[#allocation5 + $0xd0] ss:$8 sps:$4 sm:$0xff]   ;;  %v1366_v10 = vld [vmem:[#allocation5 + $0xe4] ss:$8 sps:$4 sm:$0xff]  }
  0x50   :  { %714 = vmatprep.mubr.bf16.mxu1 %v72_v0  ;;  %v1317_v11 = vld [vmem:[#allocation5 + $0x234] ss:$8 sps:$4 sm:$0xff]   ;;  %v1315_v12 = vld [vmem:[#allocation5 + $0x230] ss:$8 sps:$4 sm:$0xff]   ;;  %v1368_v13 = vld [vmem:[#allocation5 + $0xe0] ss:$8 sps:$4 sm:$0xff]  }
  0x51   :  { %v1323_v14 = vld [vmem:[#allocation5 + $0x244] ss:$8 sps:$4 sm:$0xff]   ;;  %v1372_v15 = vld [vmem:[#allocation5 + $0xf4] ss:$8 sps:$4 sm:$0xff]   ;;  %v1374_v16 = vld [vmem:[#allocation5 + $0xf0] ss:$8 sps:$4 sm:$0xff]  }
  0x52   :  { %736 = vmatpush1.bf16.msra.mxu0 %v1260_v17  ;;  %693 = vmatpush1.bf16.msra.mxu1 %v1314_v35  ;;  %v64_v17 = vld [vmem:[#allocation2] sm:$0xff]  ;;  %v1329_v20 = vld [vmem:[#allocation5 + $0x254] ss:$8 sps:$4 sm:$0xff]   ;;  %v1339_v32 = vld [vmem:[#allocation5 + $0x270] ss:$8 sps:$4 sm:$0xff]  }
  0x53   :  { %737 = vmatprep.subr.bf16.mxu0 %v1261_v18  ;;  %694 = vmatprep.subr.bf16.mxu1 %v1318_v36  ;;  %v1321_v18 = vld [vmem:[#allocation5 + $0x240] ss:$8 sps:$4 sm:$0xff]   ;;  %v1383_v19 = vld [vmem:[#allocation5 + $0x304] ss:$8 sps:$4 sm:$0xff]   ;;  %v71_v21 = vpack.c.bf16 %v64_v17, %v64_v17  ;;  %v70_v27 = vld [vmem:[#allocation2 + $0x30] sm:$0xff] }
  0x54   :  { %v1381_v22 = vld [vmem:[#allocation5 + $0x300] ss:$8 sps:$4 sm:$0xff]   ;;  %v1335_v25 = vld [vmem:[#allocation5 + $0x264] ss:$8 sps:$4 sm:$0xff]   ;;  %v1388_v31 = vld [vmem:[#allocation7] sm:$0xff]  }
  0x55   :  { %v1333_v28 = vld [vmem:[#allocation5 + $0x260] ss:$8 sps:$4 sm:$0xff]   ;;  %v1390_v35 = vld [vmem:[#allocation7 + $0x8] sm:$0xff]  }
  0x56   :  { %738 = vmatpush1.bf16.msra.mxu0 %v1263_v23  ;;  %695 = vmatpush1.bf16.msra.mxu1 %v1320_v39  ;;  %v1327_v23 = vld [vmem:[#allocation5 + $0x250] ss:$8 sps:$4 sm:$0xff]   ;;  %v1345_v36 = vld [vmem:[#allocation5 + $0x280] ss:$8 sps:$4 sm:$0xff]  }
  0x57   :  { %739 = vmatprep.subr.bf16.mxu0 %v1264_v24  ;;  %696 = vmatprep.subr.bf16.mxu1 %v1324_v40  ;;  %v1387_v24 = vld [vmem:[#allocation7 + $0x40] sm:$0xff]   ;;  %v1392_v39 = vld [vmem:[#allocation7 + $0x10] sm:$0xff]   ;;  %v68_v55 = vld [vmem:[#allocation2 + $0x20] sm:$0xff] }
  0x58   :  { %v1351_v40 = vld [vmem:[#allocation5 + $0x290] ss:$8 sps:$4 sm:$0xff]   ;;  %v1399_v61 = vld [vmem:[#allocation7 + $0x70] sm:$0xff]   ;;  %v1402_v0 = vld [vmem:[#allocation7 + $0x38] sm:$0xff]  }
  0x5a   :  { %740 = vmatpush1.bf16.msra.mxu0 %v1266_v26  ;;  %697 = vmatpush1.bf16.msra.mxu1 %v1326_v43  ;;  %v1528_v26 = vmov 0   ;;  %v1394_v43 = vld [vmem:[#allocation7 + $0x18] sm:$0xff]  }
  0x5b   :  { %741 = vmatprep.subr.bf16.mxu0 %v1267_v29  ;;  %698 = vmatprep.subr.bf16.mxu1 %v1330_v44  ;;  %v1341_v29 = vld [vmem:[#allocation5 + $0x274] ss:$8 sps:$4 sm:$0xff]   ;;  %v1357_v44 = vld [vmem:[#allocation5 + $0x2a0] ss:$8 sps:$4 sm:$0xff]  }
  0x5e   :  { %742 = vmatpush1.bf16.msra.mxu0 %v1269_v30  ;;  %699 = vmatpush1.bf16.msra.mxu1 %v1332_v47  ;;  %v77_v30 = vpack.c.bf16 %v70_v27, %v70_v27  ;;  %v1371_v47 = vld [vmem:[#allocation5 + $0x2c4] ss:$8 sps:$4 sm:$0xff]  }
  0x5f   :  { %743 = vmatprep.subr.bf16.mxu0 %v1270_v33  ;;  %700 = vmatprep.subr.bf16.mxu1 %v1336_v48  ;;  %v1389_v33 = vld [vmem:[#allocation7 + $0x48] sm:$0xff]   ;;  %v1369_v48 = vld [vmem:[#allocation5 + $0x2c0] ss:$8 sps:$4 sm:$0xff]  }
  0x62   :  { %744 = vmatpush1.bf16.msra.mxu0 %v1272_v34  ;;  %701 = vmatpush1.bf16.msra.mxu1 %v1338_v51  ;;  %v1347_v34 = vld [vmem:[#allocation5 + $0x284] ss:$8 sps:$4 sm:$0xff]  }
  0x63   :  { %745 = vmatprep.subr.bf16.mxu0 %v1273_v37  ;;  %702 = vmatprep.subr.bf16.mxu1 %v1342_v52  ;;  %v1391_v37 = vld [vmem:[#allocation7 + $0x50] sm:$0xff]  }
  0x64   :  { %v1380_v51 = vld [vmem:[#allocation5 + $0x2e4] ss:$8 sps:$4 sm:$0xff]   ;;  %v1378_v52 = vld [vmem:[#allocation5 + $0x2e0] ss:$8 sps:$4 sm:$0xff]  }
  0x66   :  { %746 = vmatpush1.bf16.msra.mxu0 %v1275_v38  ;;  %703 = vmatpush1.bf16.msra.mxu1 %v1344_v56  ;;  %v1353_v38 = vld [vmem:[#allocation5 + $0x294] ss:$8 sps:$4 sm:$0xff]   ;;  %v75_v56 = vpack.c.bf16 %v68_v55, %v68_v55 }
  0x67   :  { %747 = vmatprep.subr.bf16.mxu0 %v1276_v41  ;;  %704 = vmatprep.subr.bf16.mxu1 %v1348_v57  ;;  %v1393_v41 = vld [vmem:[#allocation7 + $0x58] sm:$0xff]   ;;  %v1395_v57 = vld [vmem:[#allocation7 + $0x60] sm:$0xff]  }
  0x6a   :  { %748 = vmatpush1.bf16.msra.mxu0 %v1278_v42  ;;  %705 = vmatpush1.bf16.msra.mxu1 %v1350_v60  ;;  %v1359_v42 = vld [vmem:[#allocation5 + $0x2a4] ss:$8 sps:$4 sm:$0xff]   ;;  %v1398_v60 = vld [vmem:[#allocation7 + $0x28] sm:$0xff]  }
  0x6b   :  { %749 = vmatprep.subr.bf16.mxu0 %v1279_v45  ;;  %706 = vmatprep.subr.bf16.mxu1 %v1354_v63  ;;  %v1365_v45 = vld [vmem:[#allocation5 + $0x2b4] ss:$8 sps:$4 sm:$0xff]   ;;  %v1401_v63 = vld [vmem:[#allocation7 + $0x78] sm:$0xff]  }
  0x6e   :  { %750 = vmatpush1.bf16.msra.mxu0 %v1281_v46  ;;  %707 = vmatpush1.bf16.msra.mxu1 %v1356_v2  ;;  %v1363_v46 = vld [vmem:[#allocation5 + $0x2b0] ss:$8 sps:$4 sm:$0xff]  }
  0x6f   :  { %751 = vmatprep.subr.bf16.mxu0 %v1285_v49  ;;  %708 = vmatprep.subr.bf16.mxu1 %v1360_v5  ;;  %v1377_v49 = vld [vmem:[#allocation5 + $0x2d4] ss:$8 sps:$4 sm:$0xff]  }
  0x72   :  { %752 = vmatpush1.bf16.msra.mxu0 %v1287_v50  ;;  %709 = vmatpush1.bf16.msra.mxu1 %v1362_v9  ;;  %v1375_v50 = vld [vmem:[#allocation5 + $0x2d0] ss:$8 sps:$4 sm:$0xff]   ;;  %v178_v9 = vlaneseq }
  0x73   :  { %753 = vmatprep.subr.bf16.mxu0 %v1291_v53  ;;  %710 = vmatprep.subr.bf16.mxu1 %v1366_v10  ;;  %v1386_v53 = vld [vmem:[#allocation5 + $0x2f4] ss:$8 sps:$4 sm:$0xff]  }
  0x74   :  { %v179_v10 = vshrl.u32 %v178_v9, 7 }
  0x76   :  { %754 = vmatpush1.bf16.msra.mxu0 %v1293_v54  ;;  %711 = vmatpush1.bf16.msra.mxu1 %v1368_v13  ;;  %v1384_v54 = vld [vmem:[#allocation5 + $0x2f0] ss:$8 sps:$4 sm:$0xff]   ;;  %v184_v13 = vsub.s32 1, %v179_v10 }
  0x77   :  { %764 = vmatprep.subr.bf16.mxu0 %v1299_v58  ;;  %712 = vmatprep.subr.bf16.mxu1 %v1372_v15  ;;  %v1396_v58 = vld [vmem:[#allocation7 + $0x20] sm:$0xff]  }
  0x79   :  { %756 = vmatmul.mubr.bf16.vlgmr.msra.gmra.mrb[0].mxu0 %v73_v59  ;;  %v1397_v59 = vld [vmem:[#allocation7 + $0x68] sm:$0xff]  }
  0x7a   :  { %765 = vmatpush1.bf16.msra.mxu0 %v1297_v62  ;;  %796 = vmatprep.mubr.bf16.mxu0 %v76_v6  ;;  %v1400_v62 = vld [vmem:[#allocation7 + $0x30] sm:$0xff]  }
  0x7b   :  { %766 = vmatprep.subr.bf16.mxu0 %v1305_v1  ;;  %713 = vmatpush1.bf16.msra.mxu1 %v1374_v16 }
  0x7c   :  { %805 = vmatprep.subr.bf16.mxu1 %v1383_v19 }
  0x7e   :  { %767 = vmatpush1.bf16.msra.mxu0 %v1303_v4  ;;  %715 = vmatmul.mubr.bf16.vlgmr.msra.gmra.mrb[0].mxu1 %v71_v21 }
  0x7f   :  { %768 = vmatprep.subr.bf16.mxu0 %v1311_v7  ;;  %806 = vmatpush1.bf16.msra.mxu1 %v1381_v22 }
  0x80   :  { %837 = vmatprep.mubr.bf16.mxu1 %v1528_v26  ;;  %1196 = vmatprep.subr.bf16.mxu1 %v1387_v24  ;;  %v1529_v26 = vmov 0.0  }
  0x82   :  { %769 = vmatpush1.bf16.msra.mxu0 %v1309_v8 }
  0x83   :  { %770 = vmatprep.subr.bf16.mxu0 %v1317_v11  ;;  %v180_v11 = vsub.s32 0, %v179_v10 }
  0x86   :  { %771 = vmatpush1.bf16.msra.mxu0 %v1315_v12  ;;  %1169 = vmatmul.mubr.msk.bf16.vlgmr.msra.gmra.mrb[4].mxu1 %vm678_vm0, %v77_v30  ;;  %v176_v12 = vld [vmem:[%s1636_s2] sm:$0x3]  ;;  %s1531_s2 = smov [#allocation8]  }
  0x87   :  { %772 = vmatprep.subr.bf16.mxu0 %v1323_v14  ;;  %1197 = vmatpush3.bf16.msra.mxu1 %v1388_v31  ;;  %v181_v14 = vrot.slane %v176_v12, %v180_v11  ;;  %v185_v15 = vrot.slane %v176_v12, %v184_v13  ;;  %s1047_s12 = sshll.u32 %s1531_s2, 4  ;;  %s1048_s12 = int_to_ptr.vmem [resolvable:$true] %s1047_s12 }
  0x88   :  { %1198 = vmatprep.subr.bf16.mxu1 %v1389_v33  ;;  %s1469_s13 = scalar_lea.vmem %s1048_s12, 128  ;;  %p1474_p11 = scmp.lt.s32.totalorder %s1048_s12, %s1048_s12 }
  0x89   :  { %p1470_p10 = scmp.ne.s32.totalorder %s1048_s12, %s1469_s13  ;;  %p1475_p12 = scmp.lt.s32.totalorder %s1469_s13, %s1469_s13 }
  0x8a   :  { %773 = vmatpush1.bf16.msra.mxu0 %v1321_v18 }
  0x8b   :  { %774 = vmatprep.subr.bf16.mxu0 %v1329_v20  ;;  %1199 = vmatpush3.bf16.msra.mxu1 %v1390_v35  ;;  %p1476_p13 = por %p1475_p12, %p1474_p11 }
  0x8c   :  { %1200 = vmatprep.subr.bf16.mxu1 %v1391_v37 }
  0x8d   :  { %p1477_p0 = pnand %p1476_p13, %p1470_p10 }
  0x8e   :  { %775 = vmatpush1.bf16.msra.mxu0 %v1327_v23 }
  0x8f   :  { %776 = vmatprep.subr.bf16.mxu0 %v1335_v25  ;;  %1201 = vmatpush3.bf16.msra.mxu1 %v1392_v39 }
  0x90   :  { %1202 = vmatprep.subr.bf16.mxu1 %v1393_v41 }
  0x92   :  { %777 = vmatpush1.bf16.msra.mxu0 %v1333_v28 }
  0x93   :  { %778 = vmatprep.subr.bf16.mxu0 %v1341_v29  ;;  %1203 = vmatpush3.bf16.msra.mxu1 %v1394_v43  ;;  %v1530_v29 = vmov 1.0|1.0  }
  0x94   :  { %1204 = vmatprep.subr.bf16.mxu1 %v1395_v57 }
  0x96   :  { %779 = vmatpush1.bf16.msra.mxu0 %v1339_v32 }
  0x97   :  { %780 = vmatprep.subr.bf16.mxu0 %v1347_v34  ;;  %1205 = vmatpush3.bf16.msra.mxu1 %v1396_v58 }
  0x98   :  { %1206 = vmatprep.subr.bf16.mxu1 %v1397_v59 }
  0x9a   :  { %781 = vmatpush1.bf16.msra.mxu0 %v1345_v36 }
  0x9b   :  { %782 = vmatprep.subr.bf16.mxu0 %v1353_v38  ;;  %1207 = vmatpush3.bf16.msra.mxu1 %v1398_v60 }
  0x9c   :  { %1208 = vmatprep.subr.bf16.mxu1 %v1399_v61 }
  0x9e   :  { %783 = vmatpush1.bf16.msra.mxu0 %v1351_v40 }
  0x9f   :  { %784 = vmatprep.subr.bf16.mxu0 %v1359_v42  ;;  %1209 = vmatpush3.bf16.msra.mxu1 %v1400_v62 }
  0xa0   :  { %1210 = vmatprep.subr.bf16.mxu1 %v1401_v63 }
  0xa2   :  { %785 = vmatpush1.bf16.msra.mxu0 %v1357_v44 }
  0xa3   :  { %786 = vmatprep.subr.bf16.mxu0 %v1365_v45  ;;  %1211 = vmatpush3.bf16.msra.mxu1 %v1402_v0 }
  0xa6   :  { %787 = vmatpush1.bf16.msra.mxu0 %v1363_v46 }
  0xa7   :  { %788 = vmatprep.subr.bf16.mxu0 %v1371_v47 }
  0xaa   :  { %789 = vmatpush1.bf16.msra.mxu0 %v1369_v48 }
  0xab   :  { %790 = vmatprep.subr.bf16.mxu0 %v1377_v49 }
  0xae   :  { %791 = vmatpush1.bf16.msra.mxu0 %v1375_v50 }
  0xaf   :  { %792 = vmatprep.subr.bf16.mxu0 %v1380_v51 }
  0xb2   :  { %793 = vmatpush1.bf16.msra.mxu0 %v1378_v52 }
  0xb3   :  { %794 = vmatprep.subr.bf16.mxu0 %v1386_v53 }
  0xb6   :  { %795 = vmatpush1.bf16.msra.mxu0 %v1384_v54 }
  0xb9   :  { %797 = vmatmul.mubr.bf16.vlgmr.msra.gmra.mrb[0].mxu0 %v75_v56 }
 0x151   :  { %v716_v1 = vpop.f32.mrb[0].mxu1 }
 0x152   :  { %v718_v2 = vpop.f32.mrb[1].mxu1  ;;  %v717_v16 = vadd.f32 %v716_v1, %v181_v14 }
 0x153   :  { %v720_v3 = vpop.f32.mrb[2].mxu1  ;;  %v719_v17 = vadd.f32 %v718_v2, %v185_v15 }
 0x154   :  { %v721_v4 = vpop.f32.mrb[3].mxu1 }
 0x159   :  { %v839_v5 = vpop.f32.mrb[4].mxu1 }
 0x15a   :  { %v841_v6 = vpop.f32.mrb[5].mxu1 }
 0x15b   :  { %v843_v7 = vpop.f32.mrb[6].mxu1 }
 0x15c   :  { %v844_v8 = vpop.f32.mrb[7].mxu1 }
 0x18c   :  { %v798_v18 = vpop.f32.mrb[0].mxu0 }
 0x18d   :  { %v1219_v19 = vadd.f32 %v798_v18, %v717_v16  ;;  %v800_v20 = vpop.f32.mrb[1].mxu0 }
 0x18e   :  { %v1222_v21 = vadd.f32 %v800_v20, %v719_v17  ;;  %v802_v22 = vpop.f32.mrb[2].mxu0 }
 0x18f   :  { %v1220_v23 = vadd.f32 %v1219_v19, %v839_v5  ;;  %v803_v24 = vpop.f32.mrb[3].mxu0 }
 0x190   :  { %v1223_v25 = vadd.f32 %v1222_v21, %v841_v6 }
 0x191   :  { %vm846_vm1 = vcmp.gt.f32.partialorder %v1220_v23, 1.0 }
 0x192   :  { %v1170_v27 = vsel %vm846_vm1, 1.0, %v1529_v26  ;;  %vm847_vm2 = vcmp.gt.f32.partialorder %v1223_v25, 1.0  ;;  %vm1192_vm4 = vmpackc.low %vm846_vm1, %vm846_vm1 }
 0x193   :  { %v1171_v28 = vsel %vm847_vm2, 1.0, %v1529_v26  ;;  %vm1190_vm3 = vmpackc.low %vm847_vm2, %vm847_vm2 }
 0x194   :  { %1191 = vmatprep.mubr.msk.bf16.mxu1 %vm1190_vm3, %v1530_v29  ;;  %v1195_v30 = vpack.c.bf16 %v1171_v28, %v1170_v27 }
 0x195   :  { %1193 = vmatmul.mubr.msk.bf16.vlgmr.msra.gmra.mrb[8].mxu1 %vm1192_vm4, %v1530_v29 }
 0x196   :  { %860 = vst [vmem:[#allocation8] sm:$0xff] %v1195_v30 }
 0x197   :  { %1480 = shalt.err (!%p1477_p0)
}
 0x198   :  { %s1481_s16 = scalar_lea.hbm %s1639_s5, 128 }
 0x199   :  { %p1482_p1 = scmp.ne.s32.totalorder %s1639_s5, %s1481_s16  ;;  %p1485_p2 = scmp.lt.u32.totalorder %s1481_s16, %s1639_s5 }
 0x19b   :  { %p1487_p3 = pnand %p1485_p2, %p1482_p1 }
 0x19d   :  { %1490 = shalt.err (!%p1487_p3)
}
 0x19e   :  { %1050 = dma.vmem_to_hbm [thread:$0]  %s1048_s12, 128, %s1639_s5, [#allocation4]   ;;  %v1173_v32 = vld [vmem:[%s1638_s4] ss:$0 sm:$0xff] }
 0x19f   :  { %s1532_s24 = smov [#allocation9]  }
 0x1a0   :  { %s1057_s25 = sshll.u32 %s1532_s24, 4  ;;  %s1058_s25 = int_to_ptr.vmem [resolvable:$true] %s1057_s25 }
 0x1a1   :  { %s1491_s26 = scalar_lea.vmem %s1058_s25, 64  ;;  %p1496_p5 = scmp.lt.s32.totalorder %s1058_s25, %s1058_s25 }
 0x1a2   :  { %p1492_p4 = scmp.ne.s32.totalorder %s1058_s25, %s1491_s26  ;;  %p1497_p6 = scmp.lt.s32.totalorder %s1491_s26, %s1491_s26 }
 0x1a4   :  { %p1498_p7 = por %p1497_p6, %p1496_p5 }
 0x1a6   :  { %p1499_p8 = pnand %p1498_p7, %p1492_p4 }
 0x268   :  { %v1212_v31 = vpop.f32.mrb[8].mxu1 }
 0x269   :  { %v1213_v33 = vpop.f32.mrb[9].mxu1 }
 0x26a   :  { %v1214_v34 = vadd.f32 %v1213_v33, %v1212_v31  ;;  %v1215_v35 = vpop.f32.mrb[10].mxu1 }
 0x26b   :  { %v1216_v36 = vpop.f32.mrb[11].mxu1 }
 0x26c   :  { %v1031_v37 = vadd.f32 %v1214_v34, %v1173_v32 }
 0x26e   :  { %vm1036_vm5 = vcmp.gt.f32.partialorder %v1031_v37, 1.0 }
 0x26f   :  { %v1194_v38 = vsel %vm1036_vm5, 1.0, %v1529_v26 }
 0x270   :  { %v1039_v39 = vpack.c.bf16 %v1194_v38, %v1194_v38 }
 0x272   :  { %1040 = vst [vmem:[#allocation9] sm:$0xf] %v1039_v39 }
 0x273   :  { %1502 = shalt.err (!%p1499_p8)
}
 0x274   :  { %s1503_s27 = scalar_lea.hbm %s1640_s6, 64 }
 0x275   :  { %p1504_p9 = scmp.ne.s32.totalorder %s1640_s6, %s1503_s27  ;;  %p1507_p10 = scmp.lt.u32.totalorder %s1503_s27, %s1640_s6 }
 0x277   :  { %p1509_p11 = pnand %p1507_p10, %p1504_p9 }
 0x279   :  { %1512 = shalt.err (!%p1509_p11)
}
 0x27a   :  { %1060 = dma.vmem_to_hbm [thread:$0]  %s1058_s25, 64, %s1640_s6, [#allocation10]  }
 0x27b   :  { %1517 = dma.done.wait [#allocation4], 128  }
 0x27c   :  { %1518 = vsyncadd [#allocation4], 4294967168 }
 0x27d   :  { %1519 = dma.done.wait [#allocation10], 64  }
 0x27e   :  { %1520 = vsyncadd [#allocation10], 4294967232 }
 0x27f   :  { %1067 = vsyncpa [#allocation3], 1 }
 0x280   :  { %1068 = vsyncpa [#allocation6], 1 }
 0x281   :  { %1069 = vsyncpa [#allocation4], 1 }
 0x282   :  { %1070 = vsyncpa [#allocation10], 1 }

</bundles_post_ra>
